<compile_context>
chip_gen: v7x
topology: tpu7x:2x2x1
jax: 0.10.0
libtpu: 0.0.40
codegen_flags: <defaults>
</compile_context>

<pallas_src>
import jax
import jax.numpy as jnp
from jax.experimental import pallas as pl
from jax.experimental.pallas import tpu as pltpu


def _round_up(x, m):
    return ((x + m - 1) // m) * m


def qnetwork_kernel(x_ref, w1_ref, w2_ref, w3_ref, b_ref, o_ref):
    a_dim = o_ref.shape[-1]
    # Layer 1: [bt, S](bf16) @ [S, 128](bf16) -> f32 acc; bias + ReLU in f32.
    h1 = jnp.dot(x_ref[...], w1_ref[...], preferred_element_type=jnp.float32)
    h1 = jnp.maximum(h1 + b_ref[0:1, :], 0.0)
    # Layer 2: [bt, 128](bf16) @ [128, 128](bf16) -> f32 acc; bias + ReLU in f32.
    h2 = jnp.dot(h1.astype(jnp.bfloat16), w2_ref[...],
                 preferred_element_type=jnp.float32)
    h2 = jnp.maximum(h2 + b_ref[1:2, :], 0.0)
    # Output layer: narrow N = action_dim; store f32 (matches fp32 module output).
    out = jnp.dot(h2.astype(jnp.bfloat16), w3_ref[...],
                  preferred_element_type=jnp.float32)
    o_ref[...] = (out + b_ref[2:3, :a_dim]).astype(o_ref.dtype)


def qnetwork_forward(x, params, *, max_block_b=1024, min_grid_steps=1):
    """x: [B, state_dim] float32.  params from init_params() (padded bf16 layout).

    min_grid_steps: set to 2 on v7x so the "parallel" batch axis is shared across
    both TensorCores even for small batches; leave at 1 on v5e/v6e.
    """
    w1, w2, w3, b = params["w1"], params["w2"], params["w3"], params["b"]
    B, S = x.shape
    HP = w1.shape[1]           # padded hidden width (128)
    a_dim = w3.shape[1]        # true action dim (narrow output)

    # Adaptive batch tile: whole batch in one step when small; stream otherwise.
    bt = min(max_block_b, _round_up(B, 8))
    if min_grid_steps > 1:
        bt = min(bt, max(8, _round_up(-(-B // min_grid_steps), 8)))
    B_pad = _round_up(B, bt)
    if B_pad != B:
        x = jnp.pad(x, ((0, B_pad - B), (0, 0)))
    x = x.astype(jnp.bfloat16)
    grid = (B_pad // bt,)

    flops = 2 * B_pad * (S * HP + HP * HP + HP * a_dim)
    bytes_accessed = (2 * (B_pad * S + S * HP + HP * HP + HP * a_dim)   # bf16
                      + 4 * (3 * HP + B_pad * a_dim))                   # f32

    out = pl.pallas_call(
        qnetwork_kernel,
        out_shape=jax.ShapeDtypeStruct((B_pad, a_dim), jnp.float32),
        grid=grid,
        in_specs=[
            pl.BlockSpec((bt, S), lambda i: (i, 0)),      # x: streamed batch tiles
            pl.BlockSpec((S, HP), lambda i: (0, 0)),      # w1: resident
            pl.BlockSpec((HP, HP), lambda i: (0, 0)),     # w2: resident
            pl.BlockSpec((HP, a_dim), lambda i: (0, 0)),  # w3: resident, narrow N
            pl.BlockSpec((3, HP), lambda i: (0, 0)),      # packed biases: resident
        ],
        out_specs=pl.BlockSpec((bt, a_dim), lambda i: (i, 0)),
        compiler_params=pltpu.CompilerParams(
            dimension_semantics=("parallel",),
        ),
        cost_estimate=pl.CostEstimate(
            flops=flops, transcendentals=0, bytes_accessed=bytes_accessed),
    )(x, w1, w2, w3, b)

    return out[:B]


def init_params(key, state_dim, action_dim, hidden=64, pad=128):
    """Deterministic synthetic parameters.

    Returns (padded_params_for_kernel, raw_pytorch_style_params).
    PyTorch nn.Linear stores weight as [out, in]; the kernel uses [in, out],
    zero-padded so the hidden dim is 128 lanes (numerically exact: padded weight
    columns/rows are zero, padded bias lanes are zero, ReLU(0)=0).  Weights are
    stored in bfloat16 (f32 accumulation in-kernel); biases stay f32.
    """
    ks = jax.random.split(key, 6)
    w1 = jax.random.normal(ks[0], (hidden, state_dim), jnp.float32) * 0.1
    b1 = jax.random.normal(ks[1], (hidden,), jnp.float32) * 0.1
    w2 = jax.random.normal(ks[2], (hidden, hidden), jnp.float32) * 0.1
    b2 = jax.random.normal(ks[3], (hidden,), jnp.float32) * 0.1
    w3 = jax.random.normal(ks[4], (action_dim, hidden), jnp.float32) * 0.1
    b3 = jax.random.normal(ks[5], (action_dim,), jnp.float32) * 0.1
    raw = dict(w1=w1, b1=b1, w2=w2, b2=b2, w3=w3, b3=b3)

    HP = pad

    def pad_to(w_in_out, rows, cols):
        z = jnp.zeros((rows, cols), jnp.float32)
        return z.at[: w_in_out.shape[0], : w_in_out.shape[1]].set(w_in_out)

    w1p = pad_to(w1.T, state_dim, HP).astype(jnp.bfloat16)     # [S, 128]
    w2p = pad_to(w2.T, HP, HP).astype(jnp.bfloat16)            # [128, 128]
    w3p = pad_to(w3.T, HP, action_dim).astype(jnp.bfloat16)    # [128, A] narrow
    b = jnp.zeros((3, HP), jnp.float32)
    b = b.at[0, :hidden].set(b1).at[1, :hidden].set(b2).at[2, :action_dim].set(b3)

    padded = dict(w1=w1p, w2=w2p, w3=w3p, b=b)
    return padded, raw


def reference_forward(x, raw):
    """Pure-JAX fp32 reference matching the PyTorch module exactly (unpadded)."""
    h1 = jnp.maximum(x @ raw["w1"].T + raw["b1"], 0.0)
    h2 = jnp.maximum(h1 @ raw["w2"].T + raw["b2"], 0.0)
    return h2 @ raw["w3"].T + raw["b3"]


if __name__ == "__main__":
    key = jax.random.PRNGKey(0)
    k_x, k_p = jax.random.split(key)

    batch = 200        # padded internally to 208 -> single grid step
    state_dim = 8      # state_shape = (8,)
    action_dim = 4     # action_shape = 4

    x = jax.random.normal(k_x, (batch, state_dim), jnp.float32)
    params, raw = init_params(k_p, state_dim, action_dim)

    out = qnetwork_forward(x, params)
    out = jax.block_until_ready(out)

    ref = reference_forward(x, raw)
    assert out.shape == (batch, action_dim)
    # bf16 operands / f32 accumulation => loosened tolerance vs the fp32 reference.
    assert jnp.allclose(out, ref, atol=5e-2, rtol=5e-2), "mismatch vs reference"

    print("KERNEL_OK")
</pallas_src>

<mosaic_0001>
module attributes {stable_mosaic.version = 11 : i64} {
  func.func @qnetwork_kernel(%arg0: i32, %arg1: memref<200x8xbf16, #tpu.memory_space<vmem>>, %arg2: memref<8x128xbf16, #tpu.memory_space<vmem>>, %arg3: memref<128x128xbf16, #tpu.memory_space<vmem>>, %arg4: memref<128x4xbf16, #tpu.memory_space<vmem>>, %arg5: memref<3x128xf32, #tpu.memory_space<vmem>>, %arg6: memref<200x4xf32, #tpu.memory_space<vmem>>) attributes {dimension_semantics = [#tpu.dimension_semantics<parallel>], iteration_bounds = array<i64: 1>, scalar_prefetch = 0 : i64, scratch_operands = 0 : i64, tpu.core_type = #tpu.core_type<tc>, window_params = [{transform_indices = @transform_0, window_bounds = array<i64: 200, 8>}, {pipeline_mode = #tpu.pipeline_mode<synchronous>, transform_indices = @transform_1, window_bounds = array<i64: 8, 128>}, {pipeline_mode = #tpu.pipeline_mode<synchronous>, transform_indices = @transform_2, window_bounds = array<i64: 128, 128>}, {pipeline_mode = #tpu.pipeline_mode<synchronous>, transform_indices = @transform_3, window_bounds = array<i64: 128, 4>}, {pipeline_mode = #tpu.pipeline_mode<synchronous>, transform_indices = @transform_4, window_bounds = array<i64: 3, 128>}, {transform_indices = @transform_5, window_bounds = array<i64: 200, 4>}]} {
    %c0 = arith.constant 0 : index
    %c0_0 = arith.constant 0 : index
    %0 = vector.load %arg1[%c0, %c0_0] : memref<200x8xbf16, #tpu.memory_space<vmem>>, vector<200x8xbf16>
    %c0_1 = arith.constant 0 : index
    %c0_2 = arith.constant 0 : index
    %1 = vector.load %arg2[%c0_1, %c0_2] : memref<8x128xbf16, #tpu.memory_space<vmem>>, vector<8x128xbf16>
    %cst = arith.constant dense<0.000000e+00> : vector<200x128xf32>
    %2 = tpu.matmul %0, %1, %cst {dimension_numbers = #tpu.dot_dimension_numbers<[1], [0], [0], [1], [0, 0, 1, 1], [], []>} : vector<200x8xbf16>, vector<8x128xbf16>, vector<200x128xf32> -> vector<200x128xf32>
    %c0_3 = arith.constant 0 : index
    %c0_4 = arith.constant 0 : index
    %3 = vector.load %arg5[%c0_3, %c0_4] : memref<3x128xf32, #tpu.memory_space<vmem>>, vector<1x128xf32>
    %4 = vector.broadcast %3 : vector<1x128xf32> to vector<200x128xf32>
    %5 = arith.addf %2, %4 : vector<200x128xf32>
    %cst_5 = arith.constant 0.000000e+00 : f32
    %6 = vector.broadcast %cst_5 : f32 to vector<200x128xf32>
    %7 = arith.maximumf %5, %6 : vector<200x128xf32>
    %8 = arith.truncf %7 : vector<200x128xf32> to vector<200x128xbf16>
    %c0_6 = arith.constant 0 : index
    %c0_7 = arith.constant 0 : index
    %9 = vector.load %arg3[%c0_6, %c0_7] : memref<128x128xbf16, #tpu.memory_space<vmem>>, vector<128x128xbf16>
    %cst_8 = arith.constant dense<0.000000e+00> : vector<200x128xf32>
    %10 = tpu.matmul %8, %9, %cst_8 {dimension_numbers = #tpu.dot_dimension_numbers<[1], [0], [0], [1], [0, 0, 1, 1], [], []>} : vector<200x128xbf16>, vector<128x128xbf16>, vector<200x128xf32> -> vector<200x128xf32>
    %c1 = arith.constant 1 : index
    %c0_9 = arith.constant 0 : index
    %11 = vector.load %arg5[%c1, %c0_9] : memref<3x128xf32, #tpu.memory_space<vmem>>, vector<1x128xf32>
    %12 = vector.broadcast %11 : vector<1x128xf32> to vector<200x128xf32>
    %13 = arith.addf %10, %12 : vector<200x128xf32>
    %cst_10 = arith.constant 0.000000e+00 : f32
    %14 = vector.broadcast %cst_10 : f32 to vector<200x128xf32>
    %15 = arith.maximumf %13, %14 : vector<200x128xf32>
    %16 = arith.truncf %15 : vector<200x128xf32> to vector<200x128xbf16>
    %c0_11 = arith.constant 0 : index
    %c0_12 = arith.constant 0 : index
    %17 = vector.load %arg4[%c0_11, %c0_12] : memref<128x4xbf16, #tpu.memory_space<vmem>>, vector<128x4xbf16>
    %cst_13 = arith.constant dense<0.000000e+00> : vector<200x4xf32>
    %18 = tpu.matmul %16, %17, %cst_13 {dimension_numbers = #tpu.dot_dimension_numbers<[1], [0], [0], [1], [0, 0, 1, 1], [], []>} : vector<200x128xbf16>, vector<128x4xbf16>, vector<200x4xf32> -> vector<200x4xf32>
    %c2 = arith.constant 2 : index
    %c0_14 = arith.constant 0 : index
    %19 = vector.load %arg5[%c2, %c0_14] : memref<3x128xf32, #tpu.memory_space<vmem>>, vector<1x4xf32>
    %20 = vector.broadcast %19 : vector<1x4xf32> to vector<200x4xf32>
    %21 = arith.addf %18, %20 : vector<200x4xf32>
    %c0_15 = arith.constant 0 : index
    %c0_16 = arith.constant 0 : index
    %22 = vector.load %arg6[%c0_15, %c0_16] : memref<200x4xf32, #tpu.memory_space<vmem>>, vector<200x4xf32>
    tpu.vector_store %arg6[%c0_15, %c0_16], %21 {strides = array<i32>} : memref<200x4xf32, #tpu.memory_space<vmem>>, vector<200x4xf32>,
    return
  }
  func.func @transform_0(%arg0: i32) -> (i32, i32) {
    %c0_i32 = arith.constant 0 : i32
    %c0_i32_0 = arith.constant 0 : i32
    return %arg0, %c0_i32 : i32, i32
  }
  func.func @transform_1(%arg0: i32) -> (i32, i32) {
    %c0_i32 = arith.constant 0 : i32
    %c0_i32_0 = arith.constant 0 : i32
    %c0_i32_1 = arith.constant 0 : i32
    return %c0_i32, %c0_i32_0 : i32, i32
  }
  func.func @transform_2(%arg0: i32) -> (i32, i32) {
    %c0_i32 = arith.constant 0 : i32
    %c0_i32_0 = arith.constant 0 : i32
    %c0_i32_1 = arith.constant 0 : i32
    return %c0_i32, %c0_i32_0 : i32, i32
  }
  func.func @transform_3(%arg0: i32) -> (i32, i32) {
    %c0_i32 = arith.constant 0 : i32
    %c0_i32_0 = arith.constant 0 : i32
    %c0_i32_1 = arith.constant 0 : i32
    return %c0_i32, %c0_i32_0 : i32, i32
  }
  func.func @transform_4(%arg0: i32) -> (i32, i32) {
    %c0_i32 = arith.constant 0 : i32
    %c0_i32_0 = arith.constant 0 : i32
    %c0_i32_1 = arith.constant 0 : i32
    return %c0_i32, %c0_i32_0 : i32, i32
  }
  func.func @transform_5(%arg0: i32) -> (i32, i32) {
    %c0_i32 = arith.constant 0 : i32
    %c0_i32_0 = arith.constant 0 : i32
    return %arg0, %c0_i32 : i32, i32
  }
}

</mosaic_0001>

<bundles_post_ra>
// kernel: tpu_custom_call.1
= control target key start
LH: loop header
LB: loop body
LE: loop exit
PB: predicated region body
PF: predicated region fallthrough
CT: control target
= control target key end

     0   :  { %vm155_vm0 = vcmask 1043456   ;;  %v1135_v0 = vmov 0.0   ;;  %vm1136_vm1 = vmmov 0   ;;  %vm115_vm2 = vcmask 64512   ;;  %s1565_s1 = inlined_call_operand.vmem [shape: bf16[8,128], index: 1, kind: input, shape index: {}]   ;;  %s1566_s0 = inlined_call_operand.vmem [shape: bf16[200,8], index: 0, kind: input, shape index: {}]   ;;  %s1567_s2 = inlined_call_operand.vmem [shape: bf16[128,128], index: 2, kind: input, shape index: {}]   ;;  %s1568_s3 = inlined_call_operand.vmem [shape: bf16[128,4], index: 3, kind: input, shape index: {}]   ;;  %s1569_s4 = inlined_call_operand.vmem [shape: f32[3,128], index: 4, kind: input, shape index: {}]   ;;  %s1570_s5 = inlined_call_operand.vmem [shape: f32[200,4], index: 5, kind: output, shape index: {}]  }
   0x1   :  { %912 = vmatprep.subr.bf16.mxu0 %v1135_v0  ;;  %v46_v1 = vld [vmem:[%s1565_s1] sm:$0xf]  ;;  %914 = vmatprep.mubr.msk.bf16.mxu0 %vm1136_vm1, %v1135_v0  ;;  %v1113_v4 = vld [vmem:[%s1566_s0 + $0x38] sm:$0xff]   ;;  %v1107_v5 = vld [vmem:[%s1566_s0 + $0x8] sm:$0xff]   ;;  %vm781_vm3 = vcmask 31744  }
   0x2   :  { %v157_v2 = vsel %vm155_vm0, %v46_v1, 0  ;;  %v1106_v3 = vld [vmem:[%s1566_s0] sm:$0xff]   ;;  %1102 = vmatprep.subr.bf16.mxu1 %v1135_v0  ;;  %942 = vmatprep.mubr.msk.bf16.mxu1 %vm1136_vm1, %v1135_v0  ;;  %v1120_v8 = vld [vmem:[%s1567_s2 + $0x8] sm:$0xff]   ;;  %v1108_v9 = vld [vmem:[%s1566_s0 + $0x10] sm:$0xff]  }
   0x3   :  { %913 = vmatpush3.bf16.msra.mxu0 %v157_v2  ;;  %1103 = vmatpush3.bf16.msra.mxu1 %v157_v2  ;;  %v1119_v6 = vld [vmem:[%s1567_s2] sm:$0xff]   ;;  %v1121_v10 = vld [vmem:[%s1567_s2 + $0x10] sm:$0xff]   ;;  %v1115_v11 = vld [vmem:[%s1566_s0 + $0x48] sm:$0xff]  }
   0x4   :  { %966 = vmatprep.subr.bf16.mxu1 %v1135_v0  ;;  %1034 = vmatprep.subr.bf16.mxu0 %v1135_v0  ;;  %v1114_v7 = vld [vmem:[%s1566_s0 + $0x40] sm:$0xff]   ;;  %v1122_v12 = vld [vmem:[%s1567_s2 + $0x18] sm:$0xff]   ;;  %v1116_v15 = vld [vmem:[%s1566_s0 + $0x50] sm:$0xff]  }
   0x5   :  { %v1109_v13 = vld [vmem:[%s1566_s0 + $0x18] sm:$0xff]   ;;  %v1123_v14 = vld [vmem:[%s1567_s2 + $0x20] sm:$0xff]   ;;  %v1124_v16 = vld [vmem:[%s1567_s2 + $0x28] sm:$0xff]  }
   0x6   :  { %915 = vmatmul.mubr.msk.bf16.vlgmr.msra.gmra.mrb[0].mxu0 %vm115_vm2, %v1106_v3  ;;  %943 = vmatmul.mubr.msk.bf16.vlgmr.msra.gmra.mrb[0].mxu1 %vm115_vm2, %v1113_v4  ;;  %v1110_v17 = vld [vmem:[%s1566_s0 + $0x20] sm:$0xff]   ;;  %v1125_v18 = vld [vmem:[%s1567_s2 + $0x30] sm:$0xff]   ;;  %v1117_v19 = vld [vmem:[%s1566_s0 + $0x58] sm:$0xff]  }
   0x7   :  { %918 = vmatprep.mubr.msk.bf16.mxu0 %vm1136_vm1, %v1135_v0  ;;  %946 = vmatprep.mubr.msk.bf16.mxu1 %vm1136_vm1, %v1135_v0  ;;  %v1111_v20 = vld [vmem:[%s1566_s0 + $0x28] sm:$0xff]   ;;  %v1118_v21 = vld [vmem:[%s1566_s0 + $0x60] ss:$0 sps:$4 sm:$0xff]   ;;  %v1112_v22 = vld [vmem:[%s1566_s0 + $0x30] sm:$0xff]  }
   0x8   :  { %967 = vmatpush3.bf16.msra.mxu1 %v1119_v6  ;;  %v1126_v23 = vld [vmem:[%s1567_s2 + $0x38] sm:$0xff]   ;;  %v1127_v24 = vld [vmem:[%s1568_s3] sm:$0xff]   ;;  %v1128_v25 = vld [vmem:[%s1568_s3 + $0x8] sm:$0xff]  }
   0x9   :  { %968 = vmatprep.subr.bf16.mxu1 %v1135_v0  ;;  %1035 = vmatpush3.bf16.msra.mxu0 %v1127_v24  ;;  %v1129_v26 = vld [vmem:[%s1568_s3 + $0x10] sm:$0xff]   ;;  %v1130_v27 = vld [vmem:[%s1568_s3 + $0x18] sm:$0xff]   ;;  %v1131_v28 = vld [vmem:[%s1568_s3 + $0x20] sm:$0xff]  }
   0xa   :  { %1036 = vmatprep.subr.bf16.mxu0 %v1135_v0  ;;  %v1132_v29 = vld [vmem:[%s1568_s3 + $0x28] sm:$0xff]   ;;  %v1313_v30 = vld [vmem:[%s1569_s4] ss:$0 sm:$0xff]  ;;  %v1133_v32 = vld [vmem:[%s1568_s3 + $0x30] sm:$0xff]  }
   0xc   :  { %969 = vmatpush3.bf16.msra.mxu1 %v1120_v8 }
   0xd   :  { %970 = vmatprep.subr.bf16.mxu1 %v1135_v0  ;;  %1037 = vmatpush3.bf16.msra.mxu0 %v1128_v25 }
   0xe   :  { %919 = vmatmul.mubr.msk.bf16.gmra.mrb[4].mxu0 %vm115_vm2, %v1107_v5  ;;  %947 = vmatmul.mubr.msk.bf16.gmra.mrb[4].mxu1 %vm115_vm2, %v1114_v7 }
   0xf   :  { %922 = vmatprep.mubr.msk.bf16.mxu0 %vm1136_vm1, %v1135_v0  ;;  %950 = vmatprep.mubr.msk.bf16.mxu1 %vm1136_vm1, %v1135_v0 }
  0x10   :  { %971 = vmatpush3.bf16.msra.mxu1 %v1121_v10  ;;  %1038 = vmatprep.subr.bf16.mxu0 %v1135_v0 }
  0x11   :  { %972 = vmatprep.subr.bf16.mxu1 %v1135_v0  ;;  %1039 = vmatpush3.bf16.msra.mxu0 %v1129_v26 }
  0x12   :  { %1040 = vmatprep.subr.bf16.mxu0 %v1135_v0 }
  0x14   :  { %973 = vmatpush3.bf16.msra.mxu1 %v1122_v12 }
  0x15   :  { %974 = vmatprep.subr.bf16.mxu1 %v1135_v0  ;;  %1041 = vmatpush3.bf16.msra.mxu0 %v1130_v27 }
  0x16   :  { %923 = vmatmul.mubr.msk.bf16.gmra.mrb[8].mxu0 %vm115_vm2, %v1108_v9  ;;  %951 = vmatmul.mubr.msk.bf16.gmra.mrb[8].mxu1 %vm115_vm2, %v1115_v11 }
  0x17   :  { %926 = vmatprep.mubr.msk.bf16.mxu0 %vm1136_vm1, %v1135_v0  ;;  %954 = vmatprep.mubr.msk.bf16.mxu1 %vm1136_vm1, %v1135_v0 }
  0x18   :  { %975 = vmatpush3.bf16.msra.mxu1 %v1123_v14  ;;  %1042 = vmatprep.subr.bf16.mxu0 %v1135_v0 }
  0x19   :  { %976 = vmatprep.subr.bf16.mxu1 %v1135_v0  ;;  %1043 = vmatpush3.bf16.msra.mxu0 %v1131_v28 }
  0x1a   :  { %1044 = vmatprep.subr.bf16.mxu0 %v1135_v0 }
  0x1c   :  { %977 = vmatpush3.bf16.msra.mxu1 %v1124_v16 }
  0x1d   :  { %978 = vmatprep.subr.bf16.mxu1 %v1135_v0  ;;  %1045 = vmatpush3.bf16.msra.mxu0 %v1132_v29 }
  0x1e   :  { %927 = vmatmul.mubr.msk.bf16.gmra.mrb[12].mxu0 %vm115_vm2, %v1109_v13  ;;  %955 = vmatmul.mubr.msk.bf16.gmra.mrb[12].mxu1 %vm115_vm2, %v1116_v15 }
  0x1f   :  { %930 = vmatprep.mubr.msk.bf16.mxu0 %vm1136_vm1, %v1135_v0  ;;  %958 = vmatprep.mubr.msk.bf16.mxu1 %vm1136_vm1, %v1135_v0 }
  0x20   :  { %979 = vmatpush3.bf16.msra.mxu1 %v1125_v18  ;;  %1046 = vmatprep.subr.bf16.mxu0 %v1135_v0 }
  0x21   :  { %980 = vmatprep.subr.bf16.mxu1 %v1135_v0  ;;  %1047 = vmatpush3.bf16.msra.mxu0 %v1133_v32 }
  0x22   :  { %1048 = vmatprep.subr.bf16.mxu0 %v1135_v0 }
  0x24   :  { %981 = vmatpush3.bf16.msra.mxu1 %v1126_v23 }
  0x26   :  { %931 = vmatmul.mubr.msk.bf16.gmra.mrb[16].mxu0 %vm115_vm2, %v1110_v17  ;;  %959 = vmatmul.mubr.msk.bf16.gmra.mrb[16].mxu1 %vm115_vm2, %v1117_v19 }
  0x27   :  { %934 = vmatprep.mubr.msk.bf16.mxu0 %vm1136_vm1, %v1135_v0  ;;  %962 = vmatprep.mubr.msk.bf16.mxu1 %vm1136_vm1, %v1135_v0 }
  0x2e   :  { %935 = vmatmul.mubr.msk.bf16.gmra.mrb[20].mxu0 %vm115_vm2, %v1111_v20  ;;  %963 = vmatmul.mubr.msk.bf16.gmra.mrb[20].mxu1 %vm115_vm2, %v1118_v21 }
  0x2f   :  { %938 = vmatprep.mubr.msk.bf16.mxu0 %vm1136_vm1, %v1135_v0  ;;  %982 = vmatprep.mubr.msk.bf16.mxu1 %vm1136_vm1, %v1135_v0 }
  0x36   :  { %939 = vmatmul.mubr.msk.bf16.gmra.mrb[24].mxu0 %vm115_vm2, %v1112_v22 }
  0x37   :  { %1050 = vmatprep.mubr.msk.bf16.mxu0 %vm1136_vm1, %v1135_v0 }
  0xd9   :  { %v193_v31 = vpop.f32.mrb[0].mxu0  ;;  %v249_v40 = vpop.f32.mrb[0].mxu1 }
  0xda   :  { %v194_v33 = vadd.f32 %v1313_v30, %v193_v31  ;;  %v916_v34 = vpop.f32.mrb[1].mxu0  ;;  %v250_v41 = vadd.f32 %v1313_v30, %v249_v40  ;;  %v944_v42 = vpop.f32.mrb[1].mxu1 }
  0xdb   :  { %v196_v35 = vpop.f32.mrb[2].mxu0  ;;  %v252_v44 = vpop.f32.mrb[2].mxu1 }
  0xdc   :  { %v197_v36 = vadd.f32 %v1313_v30, %v196_v35  ;;  %v917_v37 = vpop.f32.mrb[3].mxu0  ;;  %v295_v38 = vmax.f32 %v194_v33, 0.0  ;;  %v309_v46 = vmax.f32 %v250_v41, 0.0  ;;  %v253_v47 = vadd.f32 %v1313_v30, %v252_v44  ;;  %v945_v48 = vpop.f32.mrb[3].mxu1 }
  0xde   :  { %v296_v39 = vmax.f32 %v197_v36, 0.0  ;;  %v310_v52 = vmax.f32 %v253_v47, 0.0 }
  0xe0   :  { %v320_v43 = vpack.c.bf16 %v296_v39, %v295_v38  ;;  %v1328_v55 = vpack.c.bf16 %v310_v52, %v309_v46 }
  0xe1   :  { %v201_v45 = vpop.f32.mrb[4].mxu0  ;;  %v257_v58 = vpop.f32.mrb[4].mxu1 }
  0xe2   :  { %v202_v49 = vadd.f32 %v1313_v30, %v201_v45  ;;  %v920_v50 = vpop.f32.mrb[5].mxu0  ;;  %983 = vmatmul.mubr.bf16.vlgmr.msra.gmra.mrb[24].mxu1 %v320_v43  ;;  %v258_v59 = vadd.f32 %v1313_v30, %v257_v58  ;;  %v948_v60 = vpop.f32.mrb[5].mxu1 }
  0xe3   :  { %v204_v51 = vpop.f32.mrb[6].mxu0  ;;  %986 = vmatprep.mubr.msk.bf16.mxu1 %vm1136_vm1, %v1135_v0  ;;  %v260_v62 = vpop.f32.mrb[6].mxu1 }
  0xe4   :  { %v205_v53 = vadd.f32 %v1313_v30, %v204_v51  ;;  %v921_v54 = vpop.f32.mrb[7].mxu0  ;;  %v297_v56 = vmax.f32 %v202_v49, 0.0  ;;  %v311_v1 = vmax.f32 %v258_v59, 0.0  ;;  %v261_v2 = vadd.f32 %v1313_v30, %v260_v62  ;;  %v949_v3 = vpop.f32.mrb[7].mxu1 }
  0xe6   :  { %v298_v57 = vmax.f32 %v205_v53, 0.0  ;;  %v312_v7 = vmax.f32 %v261_v2, 0.0 }
  0xe8   :  { %v321_v61 = vpack.c.bf16 %v298_v57, %v297_v56  ;;  %v1336_v10 = vpack.c.bf16 %v312_v7, %v311_v1 }
  0xe9   :  { %v209_v63 = vpop.f32.mrb[8].mxu0  ;;  %v265_v13 = vpop.f32.mrb[8].mxu1 }
  0xea   :  { %v210_v4 = vadd.f32 %v1313_v30, %v209_v63  ;;  %v924_v5 = vpop.f32.mrb[9].mxu0  ;;  %987 = vmatmul.mubr.bf16.gmra.mrb[28].mxu1 %v321_v61  ;;  %v266_v14 = vadd.f32 %v1313_v30, %v265_v13  ;;  %v952_v15 = vpop.f32.mrb[9].mxu1 }
  0xeb   :  { %v212_v6 = vpop.f32.mrb[10].mxu0  ;;  %990 = vmatprep.mubr.msk.bf16.mxu1 %vm1136_vm1, %v1135_v0  ;;  %v268_v17 = vpop.f32.mrb[10].mxu1 }
  0xec   :  { %v213_v8 = vadd.f32 %v1313_v30, %v212_v6  ;;  %v925_v9 = vpop.f32.mrb[11].mxu0  ;;  %v299_v11 = vmax.f32 %v210_v4, 0.0  ;;  %v313_v19 = vmax.f32 %v266_v14, 0.0  ;;  %v269_v20 = vadd.f32 %v1313_v30, %v268_v17  ;;  %v953_v21 = vpop.f32.mrb[11].mxu1 }
  0xee   :  { %v300_v12 = vmax.f32 %v213_v8, 0.0  ;;  %v314_v25 = vmax.f32 %v269_v20, 0.0 }
  0xf0   :  { %v322_v16 = vpack.c.bf16 %v300_v12, %v299_v11  ;;  %v1344_v28 = vpack.c.bf16 %v314_v25, %v313_v19 }
  0xf1   :  { %v217_v18 = vpop.f32.mrb[12].mxu0  ;;  %v273_v32 = vpop.f32.mrb[12].mxu1 }
  0xf2   :  { %v218_v22 = vadd.f32 %v1313_v30, %v217_v18  ;;  %v928_v23 = vpop.f32.mrb[13].mxu0  ;;  %991 = vmatmul.mubr.bf16.gmra.mrb[32].mxu1 %v322_v16  ;;  %v274_v33 = vadd.f32 %v1313_v30, %v273_v32  ;;  %v956_v34 = vpop.f32.mrb[13].mxu1 }
  0xf3   :  { %v220_v24 = vpop.f32.mrb[14].mxu0  ;;  %994 = vmatprep.mubr.msk.bf16.mxu1 %vm1136_vm1, %v1135_v0  ;;  %v276_v36 = vpop.f32.mrb[14].mxu1 }
  0xf4   :  { %v221_v26 = vadd.f32 %v1313_v30, %v220_v24  ;;  %v929_v27 = vpop.f32.mrb[15].mxu0  ;;  %v301_v29 = vmax.f32 %v218_v22, 0.0  ;;  %v315_v38 = vmax.f32 %v274_v33, 0.0  ;;  %v277_v39 = vadd.f32 %v1313_v30, %v276_v36  ;;  %v957_v40 = vpop.f32.mrb[15].mxu1  ;;  %v1384_v22 = vld [vmem:[%s1569_s4 + $0x1] ss:$0 sm:$0xff] }
  0xf6   :  { %v302_v31 = vmax.f32 %v221_v26, 0.0  ;;  %v316_v44 = vmax.f32 %v277_v39, 0.0 }
  0xf8   :  { %v323_v35 = vpack.c.bf16 %v302_v31, %v301_v29  ;;  %v330_v47 = vpack.c.bf16 %v316_v44, %v315_v38 }
  0xf9   :  { %v225_v37 = vpop.f32.mrb[16].mxu0  ;;  %v281_v50 = vpop.f32.mrb[16].mxu1 }
  0xfa   :  { %v226_v41 = vadd.f32 %v1313_v30, %v225_v37  ;;  %v932_v42 = vpop.f32.mrb[17].mxu0  ;;  %995 = vmatmul.mubr.bf16.gmra.mrb[36].mxu1 %v323_v35  ;;  %v282_v51 = vadd.f32 %v1313_v30, %v281_v50  ;;  %v960_v52 = vpop.f32.mrb[17].mxu1 }
  0xfb   :  { %v228_v43 = vpop.f32.mrb[18].mxu0  ;;  %998 = vmatprep.mubr.msk.bf16.mxu1 %vm1136_vm1, %v1135_v0  ;;  %v284_v54 = vpop.f32.mrb[18].mxu1 }
  0xfc   :  { %v229_v45 = vadd.f32 %v1313_v30, %v228_v43  ;;  %v933_v46 = vpop.f32.mrb[19].mxu0  ;;  %v303_v48 = vmax.f32 %v226_v41, 0.0  ;;  %v317_v57 = vmax.f32 %v282_v51, 0.0  ;;  %v285_v58 = vadd.f32 %v1313_v30, %v284_v54  ;;  %v961_v59 = vpop.f32.mrb[19].mxu1 }
  0xfe   :  { %v304_v49 = vmax.f32 %v229_v45, 0.0  ;;  %v318_v63 = vmax.f32 %v285_v58, 0.0 }
 0x100   :  { %v324_v53 = vpack.c.bf16 %v304_v49, %v303_v48  ;;  %v331_v3 = vpack.c.bf16 %v318_v63, %v317_v57 }
 0x101   :  { %v233_v56 = vpop.f32.mrb[20].mxu0  ;;  %v289_v6 = vpop.f32.mrb[20].mxu1 }
 0x102   :  { %v234_v60 = vadd.f32 %v1313_v30, %v233_v56  ;;  %v936_v61 = vpop.f32.mrb[21].mxu0  ;;  %999 = vmatmul.mubr.bf16.gmra.mrb[40].mxu1 %v324_v53  ;;  %v290_v7 = vadd.f32 %v1313_v30, %v289_v6  ;;  %v964_v8 = vpop.f32.mrb[21].mxu1 }
 0x103   :  { %v236_v62 = vpop.f32.mrb[22].mxu0  ;;  %1002 = vmatprep.mubr.msk.bf16.mxu1 %vm1136_vm1, %v1135_v0  ;;  %v292_v11 = vpop.f32.mrb[22].mxu1 }
 0x104   :  { %v237_v1 = vadd.f32 %v1313_v30, %v236_v62  ;;  %v937_v2 = vpop.f32.mrb[23].mxu0  ;;  %v305_v4 = vmax.f32 %v234_v60, 0.0  ;;  %v965_v13 = vpop.f32.mrb[23].mxu1 }
 0x106   :  { %v306_v5 = vmax.f32 %v237_v1, 0.0 }
 0x108   :  { %v325_v9 = vpack.c.bf16 %v306_v5, %v305_v4 }
 0x109   :  { %v241_v12 = vpop.f32.mrb[24].mxu0 }
 0x10a   :  { %v242_v14 = vadd.f32 %v1313_v30, %v241_v12  ;;  %v940_v15 = vpop.f32.mrb[25].mxu0  ;;  %1003 = vmatmul.mubr.bf16.gmra.mrb[44].mxu1 %v325_v9 }
 0x10b   :  { %v244_v16 = vpop.f32.mrb[26].mxu0  ;;  %1006 = vmatprep.mubr.msk.bf16.mxu1 %vm1136_vm1, %v1135_v0 }
 0x10c   :  { %v245_v17 = vadd.f32 %v1313_v30, %v244_v16  ;;  %v941_v18 = vpop.f32.mrb[27].mxu0  ;;  %v307_v19 = vmax.f32 %v242_v14, 0.0  ;;  %v1134_v30 = vld [vmem:[%s1568_s3 + $0x38] sm:$0xff]  }
 0x10d   :  { %1049 = vmatpush3.bf16.msra.mxu0 %v1134_v30 }
 0x10e   :  { %v308_v20 = vmax.f32 %v245_v17, 0.0 }
 0x110   :  { %v326_v21 = vpack.c.bf16 %v308_v20, %v307_v19 }
 0x112   :  { %1007 = vmatmul.mubr.bf16.gmra.mrb[48].mxu1 %v326_v21 }
 0x113   :  { %1010 = vmatprep.mubr.msk.bf16.mxu1 %vm1136_vm1, %v1135_v0 }
 0x11a   :  { %1011 = vmatmul.mubr.bf16.gmra.mrb[52].mxu1 %v1328_v55  ;;  %v319_v55 = vmax.f32 %v290_v7, 0.0 }
 0x11b   :  { %1014 = vmatprep.mubr.msk.bf16.mxu1 %vm1136_vm1, %v1135_v0 }
 0x122   :  { %1015 = vmatmul.mubr.bf16.gmra.mrb[56].mxu1 %v1336_v10  ;;  %v332_v10 = vpack.c.bf16 %v319_v55, %v319_v55 }
 0x123   :  { %1018 = vmatprep.mubr.msk.bf16.mxu1 %vm1136_vm1, %v1135_v0 }
 0x12a   :  { %1019 = vmatmul.mubr.bf16.gmra.mrb[60].mxu1 %v1344_v28 }
 0x12b   :  { %1022 = vmatprep.mubr.msk.bf16.mxu1 %vm1136_vm1, %v1135_v0 }
 0x132   :  { %1023 = vmatmul.mubr.bf16.gmra.mrb[64].mxu1 %v330_v47 }
 0x133   :  { %1026 = vmatprep.mubr.msk.bf16.mxu1 %vm1136_vm1, %v1135_v0 }
 0x13a   :  { %1027 = vmatmul.mubr.bf16.gmra.mrb[68].mxu1 %v331_v3 }
 0x13b   :  { %1030 = vmatprep.mubr.msk.bf16.mxu1 %vm1136_vm1, %v1135_v0 }
 0x142   :  { %1031 = vmatmul.mubr.bf16.gmra.mrb[72].mxu1 %v332_v10 }
 0x1b5   :  { %v436_v23 = vpop.f32.mrb[24].mxu1 }
 0x1b6   :  { %v437_v24 = vadd.f32 %v1384_v22, %v436_v23  ;;  %v984_v25 = vpop.f32.mrb[25].mxu1 }
 0x1b7   :  { %v439_v26 = vpop.f32.mrb[26].mxu1 }
 0x1b8   :  { %v440_v27 = vadd.f32 %v1384_v22, %v439_v26  ;;  %v985_v28 = vpop.f32.mrb[27].mxu1  ;;  %v538_v29 = vmax.f32 %v437_v24, 0.0 }
 0x1ba   :  { %v539_v31 = vmax.f32 %v440_v27, 0.0 }
 0x1bc   :  { %v563_v32 = vpack.c.bf16 %v539_v31, %v538_v29 }
 0x1bd   :  { %v444_v33 = vpop.f32.mrb[28].mxu1 }
 0x1be   :  { %v445_v34 = vadd.f32 %v1384_v22, %v444_v33  ;;  %v988_v35 = vpop.f32.mrb[29].mxu1  ;;  %1051 = vmatmul.mubr.bf16.vlgmr.msra.gmra.mrb[28].mxu0 %v563_v32 }
 0x1bf   :  { %v447_v36 = vpop.f32.mrb[30].mxu1  ;;  %1054 = vmatprep.mubr.msk.bf16.mxu0 %vm1136_vm1, %v1135_v0 }
 0x1c0   :  { %v448_v37 = vadd.f32 %v1384_v22, %v447_v36  ;;  %v989_v38 = vpop.f32.mrb[31].mxu1  ;;  %v540_v39 = vmax.f32 %v445_v34, 0.0 }
 0x1c2   :  { %v541_v40 = vmax.f32 %v448_v37, 0.0 }
 0x1c4   :  { %v564_v41 = vpack.c.bf16 %v541_v40, %v540_v39 }
 0x1c5   :  { %v452_v42 = vpop.f32.mrb[32].mxu1 }
 0x1c6   :  { %v453_v43 = vadd.f32 %v1384_v22, %v452_v42  ;;  %v992_v44 = vpop.f32.mrb[33].mxu1  ;;  %1055 = vmatmul.mubr.bf16.gmra.mrb[32].mxu0 %v564_v41 }
 0x1c7   :  { %v455_v45 = vpop.f32.mrb[34].mxu1  ;;  %1058 = vmatprep.mubr.msk.bf16.mxu0 %vm1136_vm1, %v1135_v0 }
 0x1c8   :  { %v456_v46 = vadd.f32 %v1384_v22, %v455_v45  ;;  %v993_v47 = vpop.f32.mrb[35].mxu1  ;;  %v542_v48 = vmax.f32 %v453_v43, 0.0 }
 0x1ca   :  { %v543_v49 = vmax.f32 %v456_v46, 0.0 }
 0x1cc   :  { %v565_v50 = vpack.c.bf16 %v543_v49, %v542_v48 }
 0x1cd   :  { %v460_v51 = vpop.f32.mrb[36].mxu1 }
 0x1ce   :  { %v461_v52 = vadd.f32 %v1384_v22, %v460_v51  ;;  %v996_v53 = vpop.f32.mrb[37].mxu1  ;;  %1059 = vmatmul.mubr.bf16.gmra.mrb[36].mxu0 %v565_v50 }
 0x1cf   :  { %v463_v54 = vpop.f32.mrb[38].mxu1  ;;  %1062 = vmatprep.mubr.msk.bf16.mxu0 %vm1136_vm1, %v1135_v0 }
 0x1d0   :  { %v464_v56 = vadd.f32 %v1384_v22, %v463_v54  ;;  %v997_v57 = vpop.f32.mrb[39].mxu1  ;;  %v544_v58 = vmax.f32 %v461_v52, 0.0 }
 0x1d2   :  { %v545_v59 = vmax.f32 %v464_v56, 0.0 }
 0x1d4   :  { %v566_v60 = vpack.c.bf16 %v545_v59, %v544_v58 }
 0x1d5   :  { %v468_v61 = vpop.f32.mrb[40].mxu1 }
 0x1d6   :  { %v469_v62 = vadd.f32 %v1384_v22, %v468_v61  ;;  %v1000_v63 = vpop.f32.mrb[41].mxu1  ;;  %1063 = vmatmul.mubr.bf16.gmra.mrb[40].mxu0 %v566_v60 }
 0x1d7   :  { %v471_v1 = vpop.f32.mrb[42].mxu1  ;;  %1066 = vmatprep.mubr.msk.bf16.mxu0 %vm1136_vm1, %v1135_v0 }
 0x1d8   :  { %v472_v2 = vadd.f32 %v1384_v22, %v471_v1  ;;  %v1001_v3 = vpop.f32.mrb[43].mxu1  ;;  %v546_v4 = vmax.f32 %v469_v62, 0.0 }
 0x1da   :  { %v547_v5 = vmax.f32 %v472_v2, 0.0 }
 0x1dc   :  { %v567_v6 = vpack.c.bf16 %v547_v5, %v546_v4 }
 0x1dd   :  { %v476_v7 = vpop.f32.mrb[44].mxu1 }
 0x1de   :  { %v477_v8 = vadd.f32 %v1384_v22, %v476_v7  ;;  %v1004_v9 = vpop.f32.mrb[45].mxu1  ;;  %1067 = vmatmul.mubr.bf16.gmra.mrb[44].mxu0 %v567_v6 }
 0x1df   :  { %v479_v11 = vpop.f32.mrb[46].mxu1  ;;  %1070 = vmatprep.mubr.msk.bf16.mxu0 %vm1136_vm1, %v1135_v0 }
 0x1e0   :  { %v480_v12 = vadd.f32 %v1384_v22, %v479_v11  ;;  %v1005_v13 = vpop.f32.mrb[47].mxu1  ;;  %v548_v14 = vmax.f32 %v477_v8, 0.0 }
 0x1e2   :  { %v549_v15 = vmax.f32 %v480_v12, 0.0 }
 0x1e4   :  { %v568_v16 = vpack.c.bf16 %v549_v15, %v548_v14 }
 0x1e5   :  { %v484_v17 = vpop.f32.mrb[48].mxu1 }
 0x1e6   :  { %v485_v18 = vadd.f32 %v1384_v22, %v484_v17  ;;  %v1008_v19 = vpop.f32.mrb[49].mxu1  ;;  %1071 = vmatmul.mubr.bf16.gmra.mrb[48].mxu0 %v568_v16  ;;  %v1438_v16 = vld [vmem:[%s1569_s4 + $0x2] ss:$0 sm:$0xff] }
 0x1e7   :  { %v487_v20 = vpop.f32.mrb[50].mxu1  ;;  %1074 = vmatprep.mubr.msk.bf16.mxu0 %vm1136_vm1, %v1135_v0 }
 0x1e8   :  { %v488_v21 = vadd.f32 %v1384_v22, %v487_v20  ;;  %v1009_v30 = vpop.f32.mrb[51].mxu1  ;;  %v550_v55 = vmax.f32 %v485_v18, 0.0 }
 0x1ea   :  { %v551_v10 = vmax.f32 %v488_v21, 0.0 }
 0x1ec   :  { %v569_v23 = vpack.c.bf16 %v551_v10, %v550_v55 }
 0x1ed   :  { %v492_v24 = vpop.f32.mrb[52].mxu1 }
 0x1ee   :  { %v493_v25 = vadd.f32 %v1384_v22, %v492_v24  ;;  %v1012_v26 = vpop.f32.mrb[53].mxu1  ;;  %1075 = vmatmul.mubr.bf16.gmra.mrb[52].mxu0 %v569_v23 }
 0x1ef   :  { %v495_v27 = vpop.f32.mrb[54].mxu1  ;;  %1078 = vmatprep.mubr.msk.bf16.mxu0 %vm1136_vm1, %v1135_v0 }
 0x1f0   :  { %v496_v28 = vadd.f32 %v1384_v22, %v495_v27  ;;  %v1013_v29 = vpop.f32.mrb[55].mxu1  ;;  %v552_v31 = vmax.f32 %v493_v25, 0.0 }
 0x1f2   :  { %v553_v32 = vmax.f32 %v496_v28, 0.0 }
 0x1f4   :  { %v570_v33 = vpack.c.bf16 %v553_v32, %v552_v31 }
 0x1f5   :  { %v500_v34 = vpop.f32.mrb[56].mxu1 }
 0x1f6   :  { %v501_v35 = vadd.f32 %v1384_v22, %v500_v34  ;;  %v1016_v36 = vpop.f32.mrb[57].mxu1  ;;  %1079 = vmatmul.mubr.bf16.gmra.mrb[56].mxu0 %v570_v33 }
 0x1f7   :  { %v503_v37 = vpop.f32.mrb[58].mxu1  ;;  %1082 = vmatprep.mubr.msk.bf16.mxu0 %vm1136_vm1, %v1135_v0 }
 0x1f8   :  { %v504_v38 = vadd.f32 %v1384_v22, %v503_v37  ;;  %v1017_v39 = vpop.f32.mrb[59].mxu1  ;;  %v554_v40 = vmax.f32 %v501_v35, 0.0 }
 0x1fa   :  { %v555_v41 = vmax.f32 %v504_v38, 0.0 }
 0x1fc   :  { %v571_v42 = vpack.c.bf16 %v555_v41, %v554_v40 }
 0x1fd   :  { %v508_v43 = vpop.f32.mrb[60].mxu1 }
 0x1fe   :  { %v509_v44 = vadd.f32 %v1384_v22, %v508_v43  ;;  %v1020_v45 = vpop.f32.mrb[61].mxu1  ;;  %1083 = vmatmul.mubr.bf16.gmra.mrb[60].mxu0 %v571_v42 }
 0x1ff   :  { %v511_v46 = vpop.f32.mrb[62].mxu1  ;;  %1086 = vmatprep.mubr.msk.bf16.mxu0 %vm1136_vm1, %v1135_v0 }
 0x200   :  { %v512_v47 = vadd.f32 %v1384_v22, %v511_v46  ;;  %v1021_v48 = vpop.f32.mrb[63].mxu1  ;;  %v556_v49 = vmax.f32 %v509_v44, 0.0 }
 0x202   :  { %v557_v50 = vmax.f32 %v512_v47, 0.0 }
 0x204   :  { %v572_v51 = vpack.c.bf16 %v557_v50, %v556_v49 }
 0x205   :  { %v516_v52 = vpop.f32.mrb[64].mxu1 }
 0x206   :  { %v517_v53 = vadd.f32 %v1384_v22, %v516_v52  ;;  %v1024_v54 = vpop.f32.mrb[65].mxu1  ;;  %1087 = vmatmul.mubr.bf16.gmra.mrb[64].mxu0 %v572_v51 }
 0x207   :  { %v519_v56 = vpop.f32.mrb[66].mxu1  ;;  %1090 = vmatprep.mubr.msk.bf16.mxu0 %vm1136_vm1, %v1135_v0 }
 0x208   :  { %v520_v57 = vadd.f32 %v1384_v22, %v519_v56  ;;  %v1025_v58 = vpop.f32.mrb[67].mxu1  ;;  %v558_v59 = vmax.f32 %v517_v53, 0.0 }
 0x20a   :  { %v559_v60 = vmax.f32 %v520_v57, 0.0 }
 0x20c   :  { %v573_v61 = vpack.c.bf16 %v559_v60, %v558_v59 }
 0x20d   :  { %v524_v62 = vpop.f32.mrb[68].mxu1 }
 0x20e   :  { %v525_v63 = vadd.f32 %v1384_v22, %v524_v62  ;;  %v1028_v1 = vpop.f32.mrb[69].mxu1  ;;  %1091 = vmatmul.mubr.bf16.gmra.mrb[68].mxu0 %v573_v61 }
 0x20f   :  { %v527_v2 = vpop.f32.mrb[70].mxu1  ;;  %1094 = vmatprep.mubr.msk.bf16.mxu0 %vm1136_vm1, %v1135_v0 }
 0x210   :  { %v528_v3 = vadd.f32 %v1384_v22, %v527_v2  ;;  %v1029_v4 = vpop.f32.mrb[71].mxu1  ;;  %v560_v5 = vmax.f32 %v525_v63, 0.0 }
 0x212   :  { %v561_v6 = vmax.f32 %v528_v3, 0.0 }
 0x214   :  { %v574_v7 = vpack.c.bf16 %v561_v6, %v560_v5 }
 0x215   :  { %v532_v8 = vpop.f32.mrb[72].mxu1 }
 0x216   :  { %v533_v9 = vadd.f32 %v1384_v22, %v532_v8  ;;  %v1032_v11 = vpop.f32.mrb[73].mxu1  ;;  %1095 = vmatmul.mubr.bf16.gmra.mrb[72].mxu0 %v574_v7 }
 0x217   :  { %v535_v12 = vpop.f32.mrb[74].mxu1  ;;  %1098 = vmatprep.mubr.msk.bf16.mxu0 %vm1136_vm1, %v1135_v0 }
 0x218   :  { %v562_v13 = vmax.f32 %v533_v9, 0.0  ;;  %v1033_v14 = vpop.f32.mrb[75].mxu1 }
 0x21a   :  { %v575_v15 = vpack.c.bf16 %v562_v13, %v562_v13 }
 0x21e   :  { %1099 = vmatmul.mubr.bf16.gmra.mrb[76].mxu0 %v575_v15 }
 0x291   :  { %v679_v17 = vpop.f32.mrb[28].mxu0 }
 0x292   :  { %v680_v18 = vadd.f32 %v1438_v16, %v679_v17  ;;  %v1052_v22 = vpop.f32.mrb[29].mxu0 }
 0x293   :  { %v682_v19 = vpop.f32.mrb[30].mxu0 }
 0x294   :  { %782 = vst.msk [vmem:[%s1570_s5] sm:$0xff] %vm781_vm3, %v680_v18  ;;  %v683_v0 = vadd.f32 %v1438_v16, %v682_v19  ;;  %v1053_v20 = vpop.f32.mrb[31].mxu0 }
 0x296   :  { %783 = vst.msk [vmem:[%s1570_s5 + $0x8] sm:$0xff] %vm781_vm3, %v683_v0 }
 0x299   :  { %v687_v21 = vpop.f32.mrb[32].mxu0 }
 0x29a   :  { %v688_v30 = vadd.f32 %v1438_v16, %v687_v21  ;;  %v1056_v55 = vpop.f32.mrb[33].mxu0 }
 0x29b   :  { %v690_v10 = vpop.f32.mrb[34].mxu0 }
 0x29c   :  { %784 = vst.msk [vmem:[%s1570_s5 + $0x10] sm:$0xff] %vm781_vm3, %v688_v30  ;;  %v691_v23 = vadd.f32 %v1438_v16, %v690_v10  ;;  %v1057_v24 = vpop.f32.mrb[35].mxu0 }
 0x29e   :  { %785 = vst.msk [vmem:[%s1570_s5 + $0x18] sm:$0xff] %vm781_vm3, %v691_v23 }
 0x2a1   :  { %v695_v25 = vpop.f32.mrb[36].mxu0 }
 0x2a2   :  { %v696_v26 = vadd.f32 %v1438_v16, %v695_v25  ;;  %v1060_v27 = vpop.f32.mrb[37].mxu0 }
 0x2a3   :  { %v698_v28 = vpop.f32.mrb[38].mxu0 }
 0x2a4   :  { %786 = vst.msk [vmem:[%s1570_s5 + $0x20] sm:$0xff] %vm781_vm3, %v696_v26  ;;  %v699_v29 = vadd.f32 %v1438_v16, %v698_v28  ;;  %v1061_v31 = vpop.f32.mrb[39].mxu0 }
 0x2a6   :  { %787 = vst.msk [vmem:[%s1570_s5 + $0x28] sm:$0xff] %vm781_vm3, %v699_v29 }
 0x2a9   :  { %v703_v32 = vpop.f32.mrb[40].mxu0 }
 0x2aa   :  { %v704_v33 = vadd.f32 %v1438_v16, %v703_v32  ;;  %v1064_v34 = vpop.f32.mrb[41].mxu0 }
 0x2ab   :  { %v706_v35 = vpop.f32.mrb[42].mxu0 }
 0x2ac   :  { %788 = vst.msk [vmem:[%s1570_s5 + $0x30] sm:$0xff] %vm781_vm3, %v704_v33  ;;  %v707_v36 = vadd.f32 %v1438_v16, %v706_v35  ;;  %v1065_v37 = vpop.f32.mrb[43].mxu0 }
 0x2ae   :  { %789 = vst.msk [vmem:[%s1570_s5 + $0x38] sm:$0xff] %vm781_vm3, %v707_v36 }
 0x2b1   :  { %v711_v38 = vpop.f32.mrb[44].mxu0 }
 0x2b2   :  { %v712_v39 = vadd.f32 %v1438_v16, %v711_v38  ;;  %v1068_v40 = vpop.f32.mrb[45].mxu0 }
 0x2b3   :  { %v714_v41 = vpop.f32.mrb[46].mxu0 }
 0x2b4   :  { %790 = vst.msk [vmem:[%s1570_s5 + $0x40] sm:$0xff] %vm781_vm3, %v712_v39  ;;  %v715_v42 = vadd.f32 %v1438_v16, %v714_v41  ;;  %v1069_v43 = vpop.f32.mrb[47].mxu0 }
 0x2b6   :  { %791 = vst.msk [vmem:[%s1570_s5 + $0x48] sm:$0xff] %vm781_vm3, %v715_v42 }
 0x2b9   :  { %v719_v44 = vpop.f32.mrb[48].mxu0 }
 0x2ba   :  { %v720_v45 = vadd.f32 %v1438_v16, %v719_v44  ;;  %v1072_v46 = vpop.f32.mrb[49].mxu0 }
 0x2bb   :  { %v722_v47 = vpop.f32.mrb[50].mxu0 }
 0x2bc   :  { %792 = vst.msk [vmem:[%s1570_s5 + $0x50] sm:$0xff] %vm781_vm3, %v720_v45  ;;  %v723_v48 = vadd.f32 %v1438_v16, %v722_v47  ;;  %v1073_v49 = vpop.f32.mrb[51].mxu0 }
 0x2be   :  { %793 = vst.msk [vmem:[%s1570_s5 + $0x58] sm:$0xff] %vm781_vm3, %v723_v48 }
 0x2c1   :  { %v727_v50 = vpop.f32.mrb[52].mxu0 }
 0x2c2   :  { %v728_v51 = vadd.f32 %v1438_v16, %v727_v50  ;;  %v1076_v52 = vpop.f32.mrb[53].mxu0 }
 0x2c3   :  { %v730_v53 = vpop.f32.mrb[54].mxu0 }
 0x2c4   :  { %794 = vst.msk [vmem:[%s1570_s5 + $0x60] sm:$0xff] %vm781_vm3, %v728_v51  ;;  %v731_v54 = vadd.f32 %v1438_v16, %v730_v53  ;;  %v1077_v56 = vpop.f32.mrb[55].mxu0 }
 0x2c6   :  { %795 = vst.msk [vmem:[%s1570_s5 + $0x68] sm:$0xff] %vm781_vm3, %v731_v54 }
 0x2c9   :  { %v735_v57 = vpop.f32.mrb[56].mxu0 }
 0x2ca   :  { %v736_v58 = vadd.f32 %v1438_v16, %v735_v57  ;;  %v1080_v59 = vpop.f32.mrb[57].mxu0 }
 0x2cb   :  { %v738_v60 = vpop.f32.mrb[58].mxu0 }
 0x2cc   :  { %796 = vst.msk [vmem:[%s1570_s5 + $0x70] sm:$0xff] %vm781_vm3, %v736_v58  ;;  %v739_v61 = vadd.f32 %v1438_v16, %v738_v60  ;;  %v1081_v62 = vpop.f32.mrb[59].mxu0 }
 0x2ce   :  { %797 = vst.msk [vmem:[%s1570_s5 + $0x78] sm:$0xff] %vm781_vm3, %v739_v61 }
 0x2d1   :  { %v743_v63 = vpop.f32.mrb[60].mxu0 }
 0x2d2   :  { %v744_v1 = vadd.f32 %v1438_v16, %v743_v63  ;;  %v1084_v2 = vpop.f32.mrb[61].mxu0 }
 0x2d3   :  { %v746_v3 = vpop.f32.mrb[62].mxu0 }
 0x2d4   :  { %798 = vst.msk [vmem:[%s1570_s5 + $0x80] sm:$0xff] %vm781_vm3, %v744_v1  ;;  %v747_v4 = vadd.f32 %v1438_v16, %v746_v3  ;;  %v1085_v5 = vpop.f32.mrb[63].mxu0 }
 0x2d6   :  { %799 = vst.msk [vmem:[%s1570_s5 + $0x88] sm:$0xff] %vm781_vm3, %v747_v4 }
 0x2d9   :  { %v751_v6 = vpop.f32.mrb[64].mxu0 }
 0x2da   :  { %v752_v7 = vadd.f32 %v1438_v16, %v751_v6  ;;  %v1088_v8 = vpop.f32.mrb[65].mxu0 }
 0x2db   :  { %v754_v9 = vpop.f32.mrb[66].mxu0 }
 0x2dc   :  { %800 = vst.msk [vmem:[%s1570_s5 + $0x90] sm:$0xff] %vm781_vm3, %v752_v7  ;;  %v755_v11 = vadd.f32 %v1438_v16, %v754_v9  ;;  %v1089_v12 = vpop.f32.mrb[67].mxu0 }
 0x2de   :  { %801 = vst.msk [vmem:[%s1570_s5 + $0x98] sm:$0xff] %vm781_vm3, %v755_v11 }
 0x2e1   :  { %v759_v13 = vpop.f32.mrb[68].mxu0 }
 0x2e2   :  { %v760_v14 = vadd.f32 %v1438_v16, %v759_v13  ;;  %v1092_v15 = vpop.f32.mrb[69].mxu0 }
 0x2e3   :  { %v762_v17 = vpop.f32.mrb[70].mxu0 }
 0x2e4   :  { %802 = vst.msk [vmem:[%s1570_s5 + $0xa0] sm:$0xff] %vm781_vm3, %v760_v14  ;;  %v763_v18 = vadd.f32 %v1438_v16, %v762_v17  ;;  %v1093_v22 = vpop.f32.mrb[71].mxu0 }
 0x2e6   :  { %803 = vst.msk [vmem:[%s1570_s5 + $0xa8] sm:$0xff] %vm781_vm3, %v763_v18 }
 0x2e9   :  { %v767_v19 = vpop.f32.mrb[72].mxu0 }
 0x2ea   :  { %v768_v0 = vadd.f32 %v1438_v16, %v767_v19  ;;  %v1096_v20 = vpop.f32.mrb[73].mxu0 }
 0x2eb   :  { %v770_v21 = vpop.f32.mrb[74].mxu0 }
 0x2ec   :  { %804 = vst.msk [vmem:[%s1570_s5 + $0xb0] sm:$0xff] %vm781_vm3, %v768_v0  ;;  %v771_v30 = vadd.f32 %v1438_v16, %v770_v21  ;;  %v1097_v55 = vpop.f32.mrb[75].mxu0 }
 0x2ee   :  { %805 = vst.msk [vmem:[%s1570_s5 + $0xb8] sm:$0xff] %vm781_vm3, %v771_v30 }
 0x2f1   :  { %v775_v10 = vpop.f32.mrb[76].mxu0 }
 0x2f2   :  { %v776_v23 = vadd.f32 %v1438_v16, %v775_v10  ;;  %v1100_v24 = vpop.f32.mrb[77].mxu0 }
 0x2f3   :  { %v778_v25 = vpop.f32.mrb[78].mxu0 }
 0x2f4   :  { %806 = vst.msk [vmem:[%s1570_s5 + $0xc0] sm:$0xff] %vm781_vm3, %v776_v23  ;;  %v1101_v26 = vpop.f32.mrb[79].mxu0 }

</bundles_post_ra>
